<compile_context>
chip_gen: v5e
topology: v5e:2x2
jax: 0.10.0
libtpu: 0.0.40
codegen_flags: <defaults>
</compile_context>

<pallas_src>
import functools

import jax
import jax.numpy as jnp
from jax.experimental import pallas as pl
from jax.experimental.pallas import tpu as pltpu


def _finish_rows(logits, pos_mask, logits_mask, loss_scale):
    """Shared tail: masked log-softmax + masked mean, fused to minimise live [T,N] temps."""
    logits_max = jnp.max(logits, axis=1, keepdims=True)
    logits = logits - logits_max
    denom = jnp.sum(jnp.exp(logits) * logits_mask, axis=1, keepdims=True)
    log_denom = jnp.log(denom)
    pos_pairs = jnp.sum(pos_mask, axis=1, keepdims=True)
    safe_pairs = jnp.where(pos_pairs < 1e-6, 1.0, pos_pairs)
    # sum(pos * (logits - log_denom)) == sum(pos * logits) - pos_pairs * log_denom
    numer = jnp.sum(pos_mask * logits, axis=1, keepdims=True) - pos_pairs * log_denom
    return (-loss_scale) * numer / safe_pairs  # [T, 1] per-anchor-row loss


def _labels_kernel(alab_ref, clab_ref, a_ref, c_ref, out_ref, *,
                   inv_temp, loss_scale, num_valid, tile_a, matmul_dtype):
    n = c_ref.shape[0]
    a = a_ref[...].astype(jnp.float32) * inv_temp      # fold 1/T into anchor tile
    c = c_ref[...].astype(jnp.float32)
    if matmul_dtype is not None:                        # optional bf16 MXU inputs
        a = a.astype(matmul_dtype)
        c = c.astype(matmul_dtype)
    logits = jax.lax.dot_general(a, c, (((1,), (1,)), ((), ())),
                                 preferred_element_type=jnp.float32)   # [T, N]
    row0 = pl.program_id(0) * tile_a
    gr = row0 + jax.lax.broadcasted_iota(jnp.int32, (tile_a, n), 0)
    col = jax.lax.broadcasted_iota(jnp.int32, (tile_a, n), 1)
    not_diag = gr != col                                # self-contrast mask (block-offset)
    logits_mask = not_diag.astype(jnp.float32)
    pos = jnp.where((alab_ref[...] == clab_ref[...]) & not_diag & (gr < num_valid),
                    1.0, 0.0)
    out_ref[...] = _finish_rows(logits, pos, logits_mask, loss_scale)


def _mask_kernel(mrows_ref, expand_ref, a_ref, c_ref, out_ref, *,
                 inv_temp, loss_scale, num_valid, tile_a, matmul_dtype):
    n = c_ref.shape[0]
    a = a_ref[...].astype(jnp.float32) * inv_temp
    c = c_ref[...].astype(jnp.float32)
    if matmul_dtype is not None:
        a = a.astype(matmul_dtype)
        c = c.astype(matmul_dtype)
    logits = jax.lax.dot_general(a, c, (((1,), (1,)), ((), ())),
                                 preferred_element_type=jnp.float32)
    row0 = pl.program_id(0) * tile_a
    gr = row0 + jax.lax.broadcasted_iota(jnp.int32, (tile_a, n), 0)
    col = jax.lax.broadcasted_iota(jnp.int32, (tile_a, n), 1)
    not_diag = gr != col
    logits_mask = not_diag.astype(jnp.float32)
    # Expand the row-tiled [T, bsz] base mask to [T, N] with a small MXU matmul.
    base = jnp.dot(mrows_ref[...].astype(jnp.float32), expand_ref[...],
                   preferred_element_type=jnp.float32)
    pos = jnp.where(not_diag & (gr < num_valid), base, 0.0)
    out_ref[...] = _finish_rows(logits, pos, logits_mask, loss_scale)


def _round_up(x, m):
    return (x + m - 1) // m * m


def weakly_con_loss(features, labels=None, mask=None, *,
                    temperature=0.07, contrast_mode='all', base_temperature=0.07,
                    tile_a=None, matmul_dtype=None):
    """Pallas implementation of WeaklyConLoss.forward. Returns a float32 scalar.

    features: [bsz, n_views, ...]; labels: [bsz] or mask: [bsz, bsz].
    matmul_dtype=jnp.bfloat16 enables bf16 MXU inputs (softmax math stays f32).
    """
    if features.ndim < 3:
        raise ValueError('`features` needs to be [bsz, n_views, ...]')
    if features.ndim > 3:
        features = features.reshape(features.shape[0], features.shape[1], -1)
    features = features.astype(jnp.float32)
    bsz, n_views, dim = features.shape

    if labels is not None and mask is not None:
        raise ValueError('Cannot define both `labels` and `mask`')

    # torch.cat(torch.unbind(features, dim=1), dim=0) -> view-major stacking
    contrast_feature = jnp.transpose(features, (1, 0, 2)).reshape(n_views * bsz, dim)
    if contrast_mode == 'one':
        anchor_feature = features[:, 0]
        anchor_count = 1
    elif contrast_mode == 'all':
        anchor_feature = contrast_feature
        anchor_count = n_views
    else:
        raise ValueError('Unknown mode: {}'.format(contrast_mode))

    A = anchor_count * bsz
    N = n_views * bsz

    # ---- anchor-row tile size ----
    if tile_a is None:
        tile_a = 256
        # keep the live [tile_a, N] f32 working set comfortably inside VMEM
        while tile_a > 8 and 4 * tile_a * N * 4 > 24 * 1024 * 1024:
            tile_a //= 2
    tile_a = max(8, _round_up(min(tile_a, _round_up(A, 8)), 8))
    num_tiles = -(-A // tile_a)
    A_pad = num_tiles * tile_a
    pad = A_pad - A
    if pad:
        anchor_feature = jnp.pad(anchor_feature, ((0, pad), (0, 0)))

    loss_scale = float(temperature) / float(base_temperature)
    inv_temp = 1.0 / float(temperature)

    # ---- VMEM budget: double-buffered inputs + ~live [tile_a, N] temporaries ----
    vmem_bytes = (2 * tile_a * dim * 4 + 2 * N * dim * 4       # anchor + contrast
                  + 2 * tile_a * 4 + 2 * N * 4 + 2 * tile_a * 4  # labels / output
                  + 2 * tile_a * bsz * 4 + 2 * bsz * N * 4       # mask-path extras
                  + 6 * tile_a * N * 4                           # [T, N] temporaries
                  + 2 * 1024 * 1024)                             # headroom
    vmem_bytes = int(min(max(vmem_bytes, 16 * 1024 * 1024), 64 * 1024 * 1024))
    compiler_params = pltpu.CompilerParams(
        dimension_semantics=("parallel",),     # shard A-tiles across v7x TensorCores
        vmem_limit_bytes=vmem_bytes)

    if mask is None:
        # labels path (or SimCLR identity): positive mask built in-kernel from a
        # [A,1] x [1,N] label compare -> no [A,N] HBM stream at all.
        if labels is None:
            lab = jnp.arange(bsz, dtype=jnp.int32)
        else:
            lab = jnp.asarray(labels).reshape(-1).astype(jnp.int32)
            if lab.shape[0] != bsz:
                raise ValueError('Num of labels does not match num of features')
        alab = jnp.tile(lab, anchor_count)
        if pad:
            alab = jnp.pad(alab, (0, pad), constant_values=-1)
        alab = alab.reshape(A_pad, 1)
        clab = jnp.tile(lab, n_views).reshape(1, N)

        kernel = functools.partial(_labels_kernel, inv_temp=inv_temp,
                                   loss_scale=loss_scale, num_valid=A,
                                   tile_a=tile_a, matmul_dtype=matmul_dtype)
        loss_rows = pl.pallas_call(
            kernel,
            out_shape=jax.ShapeDtypeStruct((A_pad, 1), jnp.float32),
            grid_spec=pltpu.PrefetchScalarGridSpec(
                num_scalar_prefetch=0,
                grid=(num_tiles,),
                in_specs=[
                    pl.BlockSpec((tile_a, 1), lambda i: (i, 0)),     # anchor labels
                    pl.BlockSpec((1, N), lambda i: (0, 0)),          # contrast labels
                    pl.BlockSpec((tile_a, dim), lambda i: (i, 0)),   # anchor features
                    pl.BlockSpec((N, dim), lambda i: (0, 0)),        # contrast features
                ],
                out_specs=pl.BlockSpec((tile_a, 1), lambda i: (i, 0)),
            ),
            compiler_params=compiler_params,
        )(alab, clab, anchor_feature, contrast_feature)
    else:
        # user-mask path: ship only a row-tiled [A, bsz] base mask + a tiny
        # [bsz, N] expansion matrix; column-tiling happens in-kernel on the MXU.
        base = jnp.asarray(mask).astype(jnp.float32)
        mrows = jnp.tile(base, (anchor_count, 1))
        if pad:
            mrows = jnp.pad(mrows, ((0, pad), (0, 0)))
        expand = jnp.tile(jnp.eye(bsz, dtype=jnp.float32), (1, n_views))   # [bsz, N]

        kernel = functools.partial(_mask_kernel, inv_temp=inv_temp,
                                   loss_scale=loss_scale, num_valid=A,
                                   tile_a=tile_a, matmul_dtype=matmul_dtype)
        loss_rows = pl.pallas_call(
            kernel,
            out_shape=jax.ShapeDtypeStruct((A_pad, 1), jnp.float32),
            grid_spec=pltpu.PrefetchScalarGridSpec(
                num_scalar_prefetch=0,
                grid=(num_tiles,),
                in_specs=[
                    pl.BlockSpec((tile_a, bsz), lambda i: (i, 0)),   # row-tiled base mask
                    pl.BlockSpec((bsz, N), lambda i: (0, 0)),        # column expansion
                    pl.BlockSpec((tile_a, dim), lambda i: (i, 0)),   # anchor features
                    pl.BlockSpec((N, dim), lambda i: (0, 0)),        # contrast features
                ],
                out_specs=pl.BlockSpec((tile_a, 1), lambda i: (i, 0)),
            ),
            compiler_params=compiler_params,
        )(mrows, expand, anchor_feature, contrast_feature)

    return jnp.sum(loss_rows[:A, 0]) / A


def _reference_loss(features, labels=None, mask=None,
                    temperature=0.07, base_temperature=0.07):
    """Pure-JAX reference mirroring the PyTorch forward (contrast_mode='all')."""
    bsz, n_views, dim = features.shape
    if mask is None:
        if labels is None:
            base = jnp.eye(bsz, dtype=jnp.float32)
        else:
            labels = jnp.asarray(labels).reshape(-1, 1)
            base = (labels == labels.T).astype(jnp.float32)
    else:
        base = jnp.asarray(mask).astype(jnp.float32)
    contrast = jnp.transpose(features, (1, 0, 2)).reshape(n_views * bsz, dim)
    anchor = contrast
    logits = anchor @ contrast.T / temperature
    logits = logits - jnp.max(logits, axis=1, keepdims=True)
    n = anchor.shape[0]
    logits_mask = 1.0 - jnp.eye(n, dtype=jnp.float32)
    m = jnp.tile(base, (n_views, n_views)) * logits_mask
    exp_logits = jnp.exp(logits) * logits_mask
    log_prob = logits - jnp.log(exp_logits.sum(1, keepdims=True))
    pos = m.sum(1)
    pos = jnp.where(pos < 1e-6, 1.0, pos)
    mean_log_prob_pos = (m * log_prob).sum(1) / pos
    loss = -(temperature / base_temperature) * mean_log_prob_pos
    return loss.mean()


if __name__ == "__main__":
    key = jax.random.PRNGKey(0)
    bsz, n_views, dim = 8, 2, 32
    kf, _ = jax.random.split(key)
    features = jax.random.normal(kf, (bsz, n_views, dim), dtype=jnp.float32)
    # L2-normalize along the feature dim, as is conventional for SupCon inputs.
    features = features / jnp.linalg.norm(features, axis=-1, keepdims=True)
    labels = jnp.array([0, 1, 2, 3, 0, 1, 2, 3], dtype=jnp.int32)

    # labels path (primary)
    loss = jax.block_until_ready(weakly_con_loss(features, labels=labels))
    ref = _reference_loss(features, labels=labels)
    assert jnp.isfinite(loss), "non-finite loss"
    assert abs(float(loss) - float(ref)) < 1e-3, (float(loss), float(ref))

    # SimCLR (identity-mask) path — same kernel via arange labels.
    loss_id = jax.block_until_ready(weakly_con_loss(features))
    ref_id = _reference_loss(features)
    assert abs(float(loss_id) - float(ref_id)) < 1e-3, (float(loss_id), float(ref_id))

    # explicit-mask path — exercises the mask kernel; same positives as labels run.
    mask_in = (labels[:, None] == labels[None, :]).astype(jnp.float32)
    loss_m = jax.block_until_ready(weakly_con_loss(features, mask=mask_in))
    assert abs(float(loss_m) - float(ref)) < 1e-3, (float(loss_m), float(ref))

    print("KERNEL_OK")
</pallas_src>

<mosaic_0001>
module attributes {stable_mosaic.version = 11 : i64} {
  func.func @_labels_kernel(%arg0: i32, %arg1: memref<16x1xi32, #tpu.memory_space<vmem>>, %arg2: memref<1x16xi32, #tpu.memory_space<vmem>>, %arg3: memref<16x32xf32, #tpu.memory_space<vmem>>, %arg4: memref<16x32xf32, #tpu.memory_space<vmem>>, %arg5: memref<16x1xf32, #tpu.memory_space<vmem>>) attributes {dimension_semantics = [#tpu.dimension_semantics<parallel>], iteration_bounds = array<i64: 1>, scalar_prefetch = 0 : i64, scratch_operands = 0 : i64, tpu.core_type = #tpu.core_type<tc>, window_params = [{transform_indices = @transform_0, window_bounds = array<i64: 16, 1>}, {pipeline_mode = #tpu.pipeline_mode<synchronous>, transform_indices = @transform_1, window_bounds = array<i64: 1, 16>}, {transform_indices = @transform_2, window_bounds = array<i64: 16, 32>}, {pipeline_mode = #tpu.pipeline_mode<synchronous>, transform_indices = @transform_3, window_bounds = array<i64: 16, 32>}, {transform_indices = @transform_4, window_bounds = array<i64: 16, 1>}]} {
    %c0 = arith.constant 0 : index
    %c0_0 = arith.constant 0 : index
    %0 = vector.load %arg3[%c0, %c0_0] : memref<16x32xf32, #tpu.memory_space<vmem>>, vector<16x32xf32>
    %cst = arith.constant 14.2857141 : f32
    %1 = vector.broadcast %cst : f32 to vector<16x32xf32>
    %2 = arith.mulf %0, %1 : vector<16x32xf32>
    %c0_1 = arith.constant 0 : index
    %c0_2 = arith.constant 0 : index
    %3 = vector.load %arg4[%c0_1, %c0_2] : memref<16x32xf32, #tpu.memory_space<vmem>>, vector<16x32xf32>
    %cst_3 = arith.constant dense<0.000000e+00> : vector<16x16xf32>
    %4 = tpu.matmul %2, %3, %cst_3 {dimension_numbers = #tpu.dot_dimension_numbers<[1], [1], [0], [0], [0, 0, 1, 0], [], []>} : vector<16x32xf32>, vector<16x32xf32>, vector<16x16xf32> -> vector<16x16xf32>
    %c16_i32 = arith.constant 16 : i32
    %5 = arith.muli %arg0, %c16_i32 : i32
    %6 = tpu.iota {dimensions = array<i32: 0>} : vector<16x16xi32>
    %7 = vector.broadcast %5 : i32 to vector<16x16xi32>
    %8 = arith.addi %7, %6 : vector<16x16xi32>
    %9 = tpu.iota {dimensions = array<i32: 1>} : vector<16x16xi32>
    %10 = arith.cmpi ne, %8, %9 : vector<16x16xi32>
    %11 = arith.extui %10 : vector<16x16xi1> to vector<16x16xi32>
    %12 = arith.sitofp %11 : vector<16x16xi32> to vector<16x16xf32>
    %c0_4 = arith.constant 0 : index
    %c0_5 = arith.constant 0 : index
    %13 = vector.load %arg1[%c0_4, %c0_5] : memref<16x1xi32, #tpu.memory_space<vmem>>, vector<16x1xi32>
    %c0_6 = arith.constant 0 : index
    %c0_7 = arith.constant 0 : index
    %14 = vector.load %arg2[%c0_6, %c0_7] : memref<1x16xi32, #tpu.memory_space<vmem>>, vector<1x16xi32>
    %15 = vector.broadcast %13 : vector<16x1xi32> to vector<16x16xi32>
    %16 = vector.broadcast %14 : vector<1x16xi32> to vector<16x16xi32>
    %17 = arith.cmpi eq, %15, %16 : vector<16x16xi32>
    %18 = arith.andi %17, %10 : vector<16x16xi1>
    %c16_i32_8 = arith.constant 16 : i32
    %19 = vector.broadcast %c16_i32_8 : i32 to vector<16x16xi32>
    %20 = arith.cmpi slt, %8, %19 : vector<16x16xi32>
    %21 = arith.andi %18, %20 : vector<16x16xi1>
    %cst_9 = arith.constant 1.000000e+00 : f32
    %cst_10 = arith.constant 0.000000e+00 : f32
    %22 = vector.broadcast %cst_9 : f32 to vector<16x16xf32>
    %23 = vector.broadcast %cst_10 : f32 to vector<16x16xf32>
    %24 = arith.select %21, %22, %23 : vector<16x16xi1>, vector<16x16xf32>
    %cst_11 = arith.constant dense<0xFF800000> : vector<16xf32>
    %25 = vector.multi_reduction <maximumf>, %4, %cst_11 [1] : vector<16x16xf32> to vector<16xf32>
    %26 = vector.shape_cast %25 : vector<16xf32> to vector<16x1xf32>
    %27 = vector.broadcast %26 : vector<16x1xf32> to vector<16x16xf32>
    %28 = arith.subf %4, %27 : vector<16x16xf32>
    %29 = math.exp %28 : vector<16x16xf32>
    %30 = arith.mulf %29, %12 : vector<16x16xf32>
    %cst_12 = arith.constant dense<0.000000e+00> : vector<16xf32>
    %31 = vector.multi_reduction <add>, %30, %cst_12 [1] : vector<16x16xf32> to vector<16xf32>
    %32 = vector.shape_cast %31 : vector<16xf32> to vector<16x1xf32>
    %33 = math.log %32 : vector<16x1xf32>
    %cst_13 = arith.constant dense<0.000000e+00> : vector<16xf32>
    %34 = vector.multi_reduction <add>, %24, %cst_13 [1] : vector<16x16xf32> to vector<16xf32>
    %35 = vector.shape_cast %34 : vector<16xf32> to vector<16x1xf32>
    %cst_14 = arith.constant 9.99999997E-7 : f32
    %36 = vector.broadcast %cst_14 : f32 to vector<16x1xf32>
    %37 = arith.cmpf olt, %35, %36 : vector<16x1xf32>
    %cst_15 = arith.constant 1.000000e+00 : f32
    %38 = vector.broadcast %cst_15 : f32 to vector<16x1xf32>
    %39 = arith.select %37, %38, %35 : vector<16x1xi1>, vector<16x1xf32>
    %40 = arith.mulf %24, %28 : vector<16x16xf32>
    %cst_16 = arith.constant dense<0.000000e+00> : vector<16xf32>
    %41 = vector.multi_reduction <add>, %40, %cst_16 [1] : vector<16x16xf32> to vector<16xf32>
    %42 = vector.shape_cast %41 : vector<16xf32> to vector<16x1xf32>
    %43 = arith.mulf %35, %33 : vector<16x1xf32>
    %44 = arith.subf %42, %43 : vector<16x1xf32>
    %cst_17 = arith.constant -1.000000e+00 : f32
    %45 = vector.broadcast %cst_17 : f32 to vector<16x1xf32>
    %46 = arith.mulf %45, %44 : vector<16x1xf32>
    %47 = arith.divf %46, %39 : vector<16x1xf32>
    %c0_18 = arith.constant 0 : index
    %c0_19 = arith.constant 0 : index
    %48 = vector.load %arg5[%c0_18, %c0_19] : memref<16x1xf32, #tpu.memory_space<vmem>>, vector<16x1xf32>
    tpu.vector_store %arg5[%c0_18, %c0_19], %47 {strides = array<i32>} : memref<16x1xf32, #tpu.memory_space<vmem>>, vector<16x1xf32>,
    return
  }
  func.func @transform_0(%arg0: i32) -> (i32, i32) {
    %c0_i32 = arith.constant 0 : i32
    %c0_i32_0 = arith.constant 0 : i32
    return %arg0, %c0_i32 : i32, i32
  }
  func.func @transform_1(%arg0: i32) -> (i32, i32) {
    %c0_i32 = arith.constant 0 : i32
    %c0_i32_0 = arith.constant 0 : i32
    %c0_i32_1 = arith.constant 0 : i32
    return %c0_i32, %c0_i32_0 : i32, i32
  }
  func.func @transform_2(%arg0: i32) -> (i32, i32) {
    %c0_i32 = arith.constant 0 : i32
    %c0_i32_0 = arith.constant 0 : i32
    return %arg0, %c0_i32 : i32, i32
  }
  func.func @transform_3(%arg0: i32) -> (i32, i32) {
    %c0_i32 = arith.constant 0 : i32
    %c0_i32_0 = arith.constant 0 : i32
    %c0_i32_1 = arith.constant 0 : i32
    return %c0_i32, %c0_i32_0 : i32, i32
  }
  func.func @transform_4(%arg0: i32) -> (i32, i32) {
    %c0_i32 = arith.constant 0 : i32
    %c0_i32_0 = arith.constant 0 : i32
    return %arg0, %c0_i32 : i32, i32
  }
}

</mosaic_0001>

<bundles_post_ra>
// kernel: tpu_custom_call.1
= control target key start
LH: loop header
LB: loop body
LE: loop exit
PB: predicated region body
PF: predicated region fallthrough
CT: control target
= control target key end

     0   :  { %9 = vsyncpa [#allocation3], 0  ;;  %s251_s18 = smov [#allocation2]   ;;  %s252_s20 = smov 128   ;;  %s319_s0 = inlined_call_operand.vmem [shape: s32[16,1], index: 0, kind: input, shape index: {}]   ;;  %s320_s1 = inlined_call_operand.vmem [shape: s32[1,16], index: 1, kind: input, shape index: {}]   ;;  %s321_s2 = inlined_call_operand.vmem [shape: f32[16,32], index: 2, kind: input, shape index: {}]   ;;  %s322_s3 = inlined_call_operand.hbm [shape: f32[16,32], index: 3, kind: input, shape index: {}]   ;;  %s323_s4 = inlined_call_operand.vmem [shape: f32[16,1], index: 4, kind: output, shape index: {}]  }
   0x1   :  { %s20_s17 = sshll.u32 %s322_s3, 4  ;;  %s22_s19 = sshll.u32 %s251_s18, 4  ;;  %s21_s17 = int_to_ptr.hbm [resolvable:$true] %s20_s17  ;;  %s23_s19 = int_to_ptr.vmem [resolvable:$true] %s22_s19 }
   0x2   :  { %s253_s21 = smov 8  }
   0x3   :  { %28 = dma.hbm_to_vmem [thread:$0]  %s21_s17, 256, %s23_s19, [#allocation3], %s252_s20, %s252_s20, %s253_s21  }
   0x4   :  { %249 = dma.done.wait [#allocation3], 256  }
   0x5   :  { %250 = vsyncadd [#allocation3], 4294967040  ;;  %v254_v0 = vmov 0   ;;  %vm39_vm0 = vcmask 261120   ;;  %v38_v1 = vld [vmem:[#allocation2 + $0x8] sm:$0xff]  ;;  %v33_v2 = vld [vmem:[%s321_s2] sm:$0xff]  ;;  %v76_v9 = vlaneseq }
   0x6   :  { %210 = vset.pattern.permute.xlu1 %v254_v0  ;;  %211 = vset.pattern.permute.xlu0 %v254_v0  ;;  %v34_v3 = vld [vmem:[%s321_s2 + $0x8] sm:$0xff]  ;;  %v90_v4 = vld [vmem:[%s319_s0] sm:$0xff]  ;;  %v35_v6 = vmul.f32 14.285714, %v33_v2  ;;  %vm110_vm4 = vcmask 130048   ;;  %v255_v14 = vmov 0.0  }
   0x7   :  { %197 = vmatpush.xpose.msk.msra.mxu0 %vm39_vm0, %v38_v1  ;;  %203 = vmatpush.xpose.msk.msra.mxu1 %vm39_vm0, %v38_v1  ;;  %v37_v5 = vld [vmem:[#allocation2] sm:$0xff]  ;;  %v36_v7 = vmul.f32 14.285714, %v34_v3  ;;  %v91_v8 = vld [vmem:[%s319_s0 + $0x8] sm:$0xff]  ;;  %v77_v10 = vshrl.u32 %v76_v9, 7  ;;  %v83_v11 = vand.u32 127, %v76_v9 }
   0x8   :  { %94 = vperm.xlu1 %210, %v90_v4   ;;  %v212_v12 = vld [vmem:[%s320_s1] ss:$0 sm:$0xff] }
   0x9   :  { %vm84_vm1 = vcmp.ne.s32.totalorder %v77_v10, %v83_v11  ;;  %v78_v16 = vadd.s32 8, %v77_v10 }
   0xa   :  { %v201_v32 = vsel %vm84_vm1, 1.0, %v255_v14 }
   0xb   :  { %198 = vmatpush.xpose.msk.msra.mxu0 %vm39_vm0, %v37_v5  ;;  %204 = vmatpush.xpose.msk.msra.mxu1 %vm39_vm0, %v37_v5  ;;  %vm85_vm5 = vcmp.ne.s32.totalorder %v78_v16, %v83_v11 }
   0xc   :  { %v202_v37 = vsel %vm85_vm5, 1.0, %v255_v14 }
   0xe   :  { %199 = vmatmul.msk.f32.vlgmr.msra.gmra.mxu0 %vm39_vm0, %v35_v6  ;;  %200 = vmatmul.msk.f32.vlgmr.msra.gmra.mxu1 %vm39_vm0, %v36_v7  ;;  %vm189_vm0 = vcmask 7168  }
  0x10   :  { %97 = vperm.xlu1 %210, %v91_v8  }
  0x7a   :  { %v95_v13 = vpop.permute.xlu1 %94 }
  0x7b   :  { %vm100_vm2 = vcmp.eq.s32.totalorder %v95_v13, %v212_v12 }
  0x7c   :  { %vm102_vm3 = vmand %vm100_vm2, %vm84_vm1 }
  0x7d   :  { %v108_v15 = vsel %vm102_vm3, 1.0, %v255_v14 }
  0x7e   :  { %v135_v17 = vsel %vm110_vm4, %v108_v15, 0.0 }
  0x7f   :  { %136 = vadd.xlane.f32.xlu2 %v135_v17 }
  0x82   :  { %v98_v18 = vpop.permute.xlu1 %97 }
  0x83   :  { %vm101_vm6 = vcmp.eq.s32.totalorder %v98_v18, %v212_v12 }
  0x84   :  { %vm103_vm7 = vmand %vm101_vm6, %vm85_vm5 }
  0x85   :  { %v109_v19 = vsel %vm103_vm7, 1.0, %v255_v14 }
  0x86   :  { %v138_v20 = vsel %vm110_vm4, %v109_v19, 0.0 }
  0x87   :  { %139 = vadd.xlane.f32.xlu2 %v138_v20 }
  0x8b   :  { %v69_v21 = vpop.f32.mrf.mxu0  ;;  %v72_v23 = vpop.f32.mrf.mxu1 }
  0x8c   :  { %v111_v22 = vsel %vm110_vm4, %v69_v21, -inf  ;;  %v114_v24 = vsel %vm110_vm4, %v72_v23, -inf }
  0x8d   :  { %112 = vmax.xlane.f32.xlu0 %v111_v22 }
  0x95   :  { %115 = vmax.xlane.f32.xlu0 %v114_v24 }
  0xf2   :  { %v137_v43 = vpop.xlane.xlu2 %136 }
  0xf3   :  { %vm141_vm8 = vcmp.lt.f32.partialorder %v137_v43, 1e-06 }
  0xf4   :  { %v143_v44 = vsel %vm141_vm8, 1.0, %v137_v43 }
  0xf5   :  { %vm164_vm10 = vweird.f32 %v143_v44  ;;  %v170_v55 = vand.u32 2147483648, %v143_v44  ;;  %v168_v57 = vand.u32 2147483647, %v143_v44 }
  0xf7   :  { %v171_v62 = vor.u32 1.1754944e-38, %v170_v55  ;;  %vm169_vm13 = vcmp.eq.f32.partialorder %v168_v57, 8.507059e+37 }
  0xfa   :  { %v140_v45 = vpop.xlane.xlu2 %139 }
  0xfb   :  { %vm142_vm9 = vcmp.lt.f32.partialorder %v140_v45, 1e-06 }
  0xfc   :  { %v144_v46 = vsel %vm142_vm9, 1.0, %v140_v45 }
  0xfd   :  { %vm179_vm14 = vweird.f32 %v144_v46  ;;  %v185_v6 = vand.u32 2147483648, %v144_v46  ;;  %v183_v10 = vand.u32 2147483647, %v144_v46 }
  0xff   :  { %v186_v12 = vor.u32 1.1754944e-38, %v185_v6  ;;  %vm184_vm2 = vcmp.eq.f32.partialorder %v183_v10, 8.507059e+37 }
 0x100   :  { %v113_v25 = vpop.xlane.xlu0 %112 }
 0x101   :  { %v117_v26 = vsub.f32 %v69_v21, %v113_v25 }
 0x103   :  { %v119_v27 = vmul.f32 1.442695, %v117_v26  ;;  %v145_v28 = vmul.f32 %v117_v26, %v108_v15 }
 0x105   :  { %213 = vpow2.f32 %v119_v27  ;;  %v147_v29 = vsel %vm110_vm4, %v145_v28, 0.0 }
 0x106   :  { %148 = vadd.xlane.f32.xlu2 %v147_v29 }
 0x108   :  { %v116_v30 = vpop.xlane.xlu0 %115 }
 0x109   :  { %v118_v31 = vsub.f32 %v72_v23, %v116_v30 }
 0x10b   :  { %v214_v33 = vpop.eup %213  ;;  %v121_v34 = vmul.f32 1.442695, %v118_v31  ;;  %v146_v38 = vmul.f32 %v118_v31, %v109_v19 }
 0x10c   :  { %v123_v35 = vmul.f32 %v214_v33, %v201_v32 }
 0x10d   :  { %215 = vpow2.f32 %v121_v34  ;;  %v150_v41 = vsel %vm110_vm4, %v146_v38, 0.0 }
 0x10e   :  { %v125_v36 = vsel %vm110_vm4, %v123_v35, 0.0  ;;  %217 = vrcp.f32 %v143_v44 }
 0x10f   :  { %126 = vadd.xlane.f32.xlu0 %v125_v36  ;;  %219 = vrcp.f32 %v144_v46 }
 0x113   :  { %v216_v39 = vpop.eup %215 }
 0x114   :  { %v124_v40 = vmul.f32 %v216_v39, %v202_v37  ;;  %v218_v47 = vpop.eup %217 }
 0x115   :  { %v160_v48 = vmul.f32 %v218_v47, %v143_v44  ;;  %v220_v51 = vpop.eup %219  ;;  %vm165_vm11 = vweird.f32 %v218_v47 }
 0x116   :  { %v128_v42 = vsel %vm110_vm4, %v124_v40, 0.0  ;;  %v175_v53 = vmul.f32 %v220_v51, %v144_v46  ;;  %vm166_vm12 = vmor %vm164_vm10, %vm165_vm11  ;;  %vm180_vm15 = vweird.f32 %v220_v51 }
 0x117   :  { %151 = vadd.xlane.f32.xlu0 %v150_v41  ;;  %129 = vadd.xlane.f32.xlu1 %v128_v42  ;;  %v161_v49 = vsub.f32 1.0, %v160_v48  ;;  %vm181_vm1 = vmor %vm179_vm14, %vm180_vm15 }
 0x118   :  { %v176_v58 = vsub.f32 1.0, %v175_v53 }
 0x119   :  { %v162_v52 = vmul.f32 %v218_v47, %v161_v49 }
 0x11a   :  { %v177_v0 = vmul.f32 %v220_v51, %v176_v58 }
 0x11b   :  { %v163_v56 = vadd.f32 %v218_v47, %v162_v52 }
 0x11c   :  { %v178_v9 = vadd.f32 %v220_v51, %v177_v0 }
 0x11d   :  { %v167_v1 = vsel %vm166_vm12, %v218_v47, %v163_v56 }
 0x11e   :  { %v172_v5 = vsel %vm169_vm13, %v171_v62, %v167_v1  ;;  %v182_v14 = vsel %vm181_vm1, %v220_v51, %v178_v9 }
 0x11f   :  { %v187_v17 = vsel %vm184_vm2, %v186_v12, %v182_v14 }
 0x179   :  { %v149_v63 = vpop.xlane.xlu2 %148 }
 0x182   :  { %v127_v50 = vpop.xlane.xlu0 %126 }
 0x183   :  { %221 = vlog2.f32 %v127_v50 }
 0x189   :  { %v222_v54 = vpop.eup %221 }
 0x18a   :  { %v132_v59 = vmul.f32 0.6931472, %v222_v54  ;;  %v130_v60 = vpop.xlane.xlu1 %129  ;;  %v152_v13 = vpop.xlane.xlu0 %151 }
 0x18b   :  { %223 = vlog2.f32 %v130_v60 }
 0x18c   :  { %v153_v61 = vmul.f32 %v137_v43, %v132_v59 }
 0x18e   :  { %v155_v2 = vsub.f32 %v149_v63, %v153_v61 }
 0x190   :  { %v157_v3 = vmul.f32 -1.0, %v155_v2 }
 0x191   :  { %v224_v4 = vpop.eup %223 }
 0x192   :  { %v173_v7 = vmul.f32 %v172_v5, %v157_v3  ;;  %v134_v8 = vmul.f32 0.6931472, %v224_v4 }
 0x194   :  { %v154_v11 = vmul.f32 %v140_v45, %v134_v8  ;;  %190 = vst.msk [vmem:[%s323_s4] sm:$0xff] %vm189_vm0, %v173_v7 }
 0x196   :  { %v156_v15 = vsub.f32 %v152_v13, %v154_v11 }
 0x198   :  { %v158_v16 = vmul.f32 -1.0, %v156_v15 }
 0x19a   :  { %v188_v18 = vmul.f32 %v187_v17, %v158_v16 }
 0x19c   :  { %191 = vst.msk [vmem:[%s323_s4 + $0x8] sm:$0xff] %vm189_vm0, %v188_v18 }
 0x19d   :  { %196 = vsyncpa [#allocation3], 1 }

</bundles_post_ra>
